<compile_context>
chip_gen: v5e
topology: v5e:2x2
jax: 0.10.0
libtpu: 0.0.40
codegen_flags: <defaults>
</compile_context>

<pallas_src>
import functools
import math

import jax
import jax.numpy as jnp
from jax import lax
from jax.experimental import pallas as pl
from jax.experimental.pallas import tpu as pltpu

# Channel padding granularity: 16 keeps every sublane offset aligned for the
# packed bf16 tensors (bf16 tiles span 16 sublanes).
CPAD = 16


def _round_up(n, m):
    return ((n + m - 1) // m) * m


def _pad_channels(arr, target, axis):
    c = arr.shape[axis]
    if target == c:
        return arr
    pads = [(0, 0)] * arr.ndim
    pads[axis] = (0, target - c)
    return jnp.pad(arr, pads)


@functools.lru_cache(maxsize=None)
def _vmem_limit_bytes():
    # Generation-aware VMEM cap: ~56 MiB on v7x (64 MiB/TC), ~112 MiB on
    # v5e/v6e (128 MiB); always leave 1/8 headroom for compiler scratch.
    cap = 64 * 1024 * 1024
    try:
        cap = int(pltpu.get_tpu_info().vmem_capacity_bytes)
    except Exception:
        pass
    return int(cap - cap // 8)


@functools.lru_cache(maxsize=None)
def _num_tensorcores():
    # Only v7x has 2 TensorCores per chip; used to keep the parallel batch
    # grid long enough to shard across both cores.
    try:
        kind = jax.devices()[0].device_kind.lower()
    except Exception:
        return 1
    return 2 if "v7" in kind else 1


def _choose_bblk(batch, fpad):
    # Fatten the recursion's MXU LHS (target >= 256 rows per grid step) while
    # keeping >= one grid step per TensorCore; must divide the batch.
    bblk = min(batch, max(1, 256 // fpad))
    bblk = min(bblk, max(1, batch // _num_tensorcores()))
    while batch % bblk:
        bblk -= 1
    return max(bblk, 1)


def _resident_spec(shape, index_map):
    """BlockSpec for a grid-invariant operand: single VMEM buffer (the block
    index never changes over the grid, so double-buffering only wastes VMEM)."""
    if hasattr(pl, "Buffered"):
        try:
            return pl.BlockSpec(shape, index_map, pipeline_mode=pl.Buffered(1))
        except Exception:
            pass
    return pl.BlockSpec(shape, index_map)


# ----------------------------- Pallas kernels ------------------------------


def _cheb_body(lap_ref, x_ref, w_ref, b_ref, scale_ref, shift_ref,
               o_ref, sum_ref, sq_ref, stack_ref, *, K, fpad, bblk, fout_pad):
    """Chebyshev conv + bias for `bblk` batch elements (flat [rows, V] layout).

    lap_ref  : (V, V)                 bf16, equals L^T
    x_ref    : (bblk*fpad, V)         input (f32 or bf16), channels padded
    w_ref    : (fout_pad, K*fpad)     bf16 re-ordered / padded weight
    b_ref    : (fout_pad, 1)          f32 bias
    scale/shift_ref : (bblk*fpad, 1)  f32 BN affine of the previous block
                      (fused input BN+ReLU); None when not fusing.
    o_ref    : (bblk*fout_pad, V)     conv output (pre-BN), f32 or bf16
    sum_ref  : (fout_pad, 1)          f32 per-channel sum over this step
    sq_ref   : (fout_pad, 1)          f32 per-channel sum of squares
    stack_ref: (bblk*K*fpad, V)       bf16 VMEM scratch, all Chebyshev orders
    """
    lap_t = lap_ref[...]                                  # (V, V) bf16 == L^T

    x0 = x_ref[...].astype(jnp.float32)                   # (bblk*fpad, V)
    if scale_ref is not None:
        # Previous block's BatchNorm + ReLU fused into this conv's input.
        x0 = jnp.maximum(x0 * scale_ref[...] + shift_ref[...], 0.0)

    kf = K * fpad

    def store_order(k, val):                              # val: (bblk*fpad, V) f32
        for i in range(bblk):
            stack_ref[i * kf + k * fpad:i * kf + (k + 1) * fpad, :] = (
                val[i * fpad:(i + 1) * fpad, :].astype(jnp.bfloat16))

    # Chebyshev recursion on the fat (bblk*fpad, V) LHS: one big MXU matmul
    # per order instead of bblk tiny (fpad, V) ones.
    store_order(0, x0)
    if K > 1:
        x1 = jnp.dot(x0.astype(jnp.bfloat16), lap_t,
                     preferred_element_type=jnp.float32)
        store_order(1, x1)
        x_prev, x_cur = x0, x1
        for k in range(2, K):
            x_nxt = 2.0 * jnp.dot(x_cur.astype(jnp.bfloat16), lap_t,
                                  preferred_element_type=jnp.float32) - x_prev
            store_order(k, x_nxt)
            x_prev, x_cur = x_cur, x_nxt

    # (order, channel) contraction as one GEMM per batch element + bias, plus
    # per-channel BN partials (lane reduction; channels stay on sublanes).
    w = w_ref[...]
    b = b_ref[...]
    csum = jnp.zeros((fout_pad, 1), jnp.float32)
    csq = jnp.zeros((fout_pad, 1), jnp.float32)
    for i in range(bblk):
        y = jnp.dot(w, stack_ref[i * kf:(i + 1) * kf, :],
                    preferred_element_type=jnp.float32) + b
        o_ref[i * fout_pad:(i + 1) * fout_pad, :] = y.astype(o_ref.dtype)
        csum = csum + jnp.sum(y, axis=1, keepdims=True)
        csq = csq + jnp.sum(y * y, axis=1, keepdims=True)
    sum_ref[...] = csum
    sq_ref[...] = csq


def _cheb_kernel_plain(lap_ref, x_ref, w_ref, b_ref, o_ref, sum_ref, sq_ref,
                       stack_ref, *, K, fpad, bblk, fout_pad):
    _cheb_body(lap_ref, x_ref, w_ref, b_ref, None, None, o_ref, sum_ref,
               sq_ref, stack_ref, K=K, fpad=fpad, bblk=bblk, fout_pad=fout_pad)


def _cheb_kernel_fused(lap_ref, x_ref, w_ref, b_ref, scale_ref, shift_ref,
                       o_ref, sum_ref, sq_ref, stack_ref, *, K, fpad, bblk,
                       fout_pad):
    _cheb_body(lap_ref, x_ref, w_ref, b_ref, scale_ref, shift_ref, o_ref,
               sum_ref, sq_ref, stack_ref, K=K, fpad=fpad, bblk=bblk,
               fout_pad=fout_pad)


def bn_relu_transpose_kernel(x_ref, scale_ref, shift_ref, o_ref, *, fout):
    # Fused BN + ReLU + transpose back to [vertices, channels] for one batch.
    y = jnp.maximum(x_ref[...] * scale_ref[...] + shift_ref[...], 0.0)
    o_ref[...] = jnp.transpose(y)[:, :fout]


# ------------------------------ JAX wrappers --------------------------------


def _prep_weight(weight, fpad, fout_pad):
    """(K, Fin, Fout) torch parameter -> (Fout_pad, K*Fpad) bf16 kernel weight.

    Reproduces the reference cheb_conv flattening exactly: the input stack is
    flattened per row as (fin, k) with k fastest, while weight.view(Fin*K,
    Fout) flattens the (K, Fin, Fout) buffer row-major, so the weight applied
    to (order k, channel fin) is flat row fin*K + k, i.e.
    weight.reshape(Fin, K, Fout)[fin, k].
    """
    K, Fin, Fout = weight.shape
    w_eff = weight.reshape(Fin, K, Fout)                # [fin, k, fout]
    w_t = jnp.transpose(w_eff, (2, 1, 0))               # [fout, k, fin]
    w_t = _pad_channels(w_t, fpad, axis=2)              # zero-pad fin  -> fpad
    w_t = _pad_channels(w_t, fout_pad, axis=0)          # zero-pad fout -> fout_pad
    return w_t.reshape(fout_pad, K * fpad).astype(jnp.bfloat16)


def cheb_conv_block(lap_t, x_flat, weight, bias, input_scale=None,
                    input_shift=None, *, batch, out_dtype=jnp.float32):
    """ChebConv + bias on the flat [B*Cpad, V] layout + BN partial sums.

    If input_scale/shift are given, the previous block's BatchNorm + ReLU is
    applied to the input inside the kernel (removes an HBM round-trip).
    Returns (conv_out [B*Fout_pad, V], per-step sums, per-step sumsq, Fout_pad).
    """
    rows, V = x_flat.shape
    assert rows % batch == 0
    fpad = rows // batch
    # BN statistics reduce over the true (unpadded) vertex axis - keep it so.
    assert V == lap_t.shape[0] == lap_t.shape[1]
    K, Fin, Fout = weight.shape
    fout_pad = _round_up(Fout, CPAD)

    bblk = _choose_bblk(batch, fpad)
    grid_b = batch // bblk

    w_kern = _prep_weight(weight, fpad, fout_pad)
    b_kern = _pad_channels(bias.reshape(Fout, 1).astype(jnp.float32),
                           fout_pad, axis=0)

    fuse = input_scale is not None
    inputs = [lap_t, x_flat, w_kern, b_kern]
    in_specs = [
        _resident_spec((V, V), lambda g: (0, 0)),                # L^T
        pl.BlockSpec((bblk * fpad, V), lambda g: (g, 0)),        # x
        _resident_spec((fout_pad, K * fpad), lambda g: (0, 0)),  # W
        _resident_spec((fout_pad, 1), lambda g: (0, 0)),         # bias
    ]
    if fuse:
        # Replicate the per-channel affine across the bblk batch rows so it
        # matches the flat [bblk*fpad, V] input layout.
        inputs += [jnp.tile(input_scale, (bblk, 1)),
                   jnp.tile(input_shift, (bblk, 1))]
        in_specs += [
            _resident_spec((bblk * fpad, 1), lambda g: (0, 0)),
            _resident_spec((bblk * fpad, 1), lambda g: (0, 0)),
        ]
        kern = functools.partial(_cheb_kernel_fused, K=K, fpad=fpad,
                                 bblk=bblk, fout_pad=fout_pad)
    else:
        kern = functools.partial(_cheb_kernel_plain, K=K, fpad=fpad,
                                 bblk=bblk, fout_pad=fout_pad)

    grid_spec = pltpu.PrefetchScalarGridSpec(
        num_scalar_prefetch=0,
        grid=(grid_b,),
        in_specs=in_specs,
        out_specs=(
            pl.BlockSpec((bblk * fout_pad, V), lambda g: (g, 0)),
            pl.BlockSpec((pl.Squeezed(), fout_pad, 1), lambda g: (g, 0, 0)),
            pl.BlockSpec((pl.Squeezed(), fout_pad, 1), lambda g: (g, 0, 0)),
        ),
        scratch_shapes=[pltpu.VMEM((bblk * K * fpad, V), jnp.bfloat16)],
    )
    y_flat, psum, psq = pl.pallas_call(
        kern,
        out_shape=(
            jax.ShapeDtypeStruct((batch * fout_pad, V), out_dtype),
            jax.ShapeDtypeStruct((grid_b, fout_pad, 1), jnp.float32),
            jax.ShapeDtypeStruct((grid_b, fout_pad, 1), jnp.float32),
        ),
        grid_spec=grid_spec,
        compiler_params=pltpu.CompilerParams(
            dimension_semantics=("parallel",),
            vmem_limit_bytes=_vmem_limit_bytes(),
        ),
    )(*inputs)
    return y_flat, psum, psq, fout_pad


def bn_scale_shift(psum, psq, gamma, beta, count):
    """Tiny XLA finalize: per-step partials -> BN affine (scale, shift)."""
    cpad = psum.shape[1]
    gamma = _pad_channels(gamma, cpad, axis=0)
    beta = _pad_channels(beta, cpad, axis=0)
    s = jnp.sum(psum[..., 0], axis=0)                   # [Cpad]
    q = jnp.sum(psq[..., 0], axis=0)                    # [Cpad]
    mean = s / count
    # Biased variance (training-mode BatchNorm1d, eps=1e-5).  The clamp guards
    # the E[x^2]-E[x]^2 form against tiny negative cancellation errors.
    # TODO(synk): switch to a shifted / Welford accumulation for very large B*V.
    var = jnp.maximum(q / count - mean * mean, 0.0)
    inv = lax.rsqrt(var + 1e-5)
    scale = gamma * inv
    shift = beta - mean * scale
    return scale.reshape(-1, 1), shift.reshape(-1, 1)


def bn_relu_transpose(y_flat, scale, shift, batch, fout):
    """y = relu(x * scale + shift), emitted directly as [B, V, Fout]."""
    rows, V = y_flat.shape
    cpad = rows // batch
    return pl.pallas_call(
        functools.partial(bn_relu_transpose_kernel, fout=fout),
        out_shape=jax.ShapeDtypeStruct((batch, V, fout), jnp.float32),
        grid=(batch,),
        in_specs=[
            pl.BlockSpec((cpad, V), lambda b: (b, 0)),
            _resident_spec((cpad, 1), lambda b: (0, 0)),
            _resident_spec((cpad, 1), lambda b: (0, 0)),
        ],
        out_specs=pl.BlockSpec((pl.Squeezed(), V, fout), lambda b: (b, 0, 0)),
        compiler_params=pltpu.CompilerParams(
            dimension_semantics=("parallel",)),
    )(y_flat, scale, shift)


def prepare_laplacian(lap):
    """One-time prep outside the jitted forward: bf16 L^T for the MXU.

    Graph Laplacians are symmetric so the transpose is a formality, but it is
    kept for exactness with the reference torch.sparse.mm(L, x) contraction.
    """
    return jnp.asarray(lap).T.astype(jnp.bfloat16)


@jax.jit
def spherical_cheb_bn2(x, lap_t, params):
    """Forward of SphericalChebBN2: two (ChebConv -> BN -> ReLU) blocks."""
    (w1, b1, g1, bt1), (w2, b2, g2, bt2) = params
    B, V, fin = x.shape
    count = float(B * V)

    # Input -> flat lane-dense [B*Cpad, V] layout.
    fpad1 = _round_up(fin, CPAD)
    x_t = jnp.transpose(x, (0, 2, 1))                   # [B, Fin, V]
    x_flat = _pad_channels(x_t, fpad1, axis=1).reshape(B * fpad1, V)

    # Block 1: conv + BN partials.  Its output only feeds a bf16 MXU cast in
    # block 2, so it is stored bf16 (halves the largest inter-block HBM pass);
    # its BN+ReLU is fused into block 2's conv input.
    y1, s1, q1, _ = cheb_conv_block(lap_t, x_flat, w1, b1, batch=B,
                                    out_dtype=jnp.bfloat16)
    sc1, sh1 = bn_scale_shift(s1, q1, g1, bt1, count)

    # Block 2: conv with block-1 normalize+ReLU applied in-kernel.
    y2, s2, q2, _ = cheb_conv_block(lap_t, y1, w2, b2, sc1, sh1, batch=B,
                                    out_dtype=jnp.float32)
    sc2, sh2 = bn_scale_shift(s2, q2, g2, bt2, count)

    # Final normalize + ReLU fused with the transpose back to [B, V, Fout].
    return bn_relu_transpose(y2, sc2, sh2, B, w2.shape[2])


# ------------------------- pure-JAX f32 reference ---------------------------


def _cheb_conv_ref(lap, x, weight):
    B, V, Fin = x.shape
    K, _, Fout = weight.shape
    x0 = jnp.transpose(x, (1, 2, 0)).reshape(V, Fin * B)
    xs = [x0]
    if K > 1:
        x1 = lap @ x0
        xs.append(x1)
        for _ in range(2, K):
            x2 = 2.0 * (lap @ x1) - x0
            xs.append(x2)
            x0, x1 = x1, x2
    xk = jnp.stack(xs, 0).reshape(K, V, Fin, B)
    xk = jnp.transpose(xk, (3, 1, 2, 0)).reshape(B * V, Fin * K)
    return (xk @ weight.reshape(Fin * K, Fout)).reshape(B, V, Fout)


def _forward_ref(x, lap, params):
    for w, b, gamma, beta in params:
        y = _cheb_conv_ref(lap, x, w) + b
        mean = jnp.mean(y, axis=(0, 1), keepdims=True)
        var = jnp.mean((y - mean) ** 2, axis=(0, 1), keepdims=True)
        x = jnp.maximum((y - mean) * lax.rsqrt(var + 1e-5) * gamma + beta, 0.0)
    return x


# ------------------------- deterministic parameters --------------------------


def init_block_params(key, in_ch, out_ch, K):
    # Matches ChebConv.kaiming_initialization + BatchNorm1d defaults.
    std = math.sqrt(2.0 / (in_ch * K))
    weight = std * jax.random.normal(key, (K, in_ch, out_ch), dtype=jnp.float32)
    bias = jnp.full((out_ch,), 0.01, dtype=jnp.float32)
    gamma = jnp.ones((out_ch,), dtype=jnp.float32)
    beta = jnp.zeros((out_ch,), dtype=jnp.float32)
    return (weight, bias, gamma, beta)


if __name__ == "__main__":
    B, V = 2, 128
    in_channels, middle_channels, out_channels = 4, 8, 6
    kernel_size = 3

    root = jax.random.PRNGKey(0)
    k_x, k_lap, k_w1, k_w2 = jax.random.split(root, 4)

    # Input: [batch, vertices, channels]
    x = jax.random.normal(k_x, (B, V, in_channels), dtype=jnp.float32)

    # Deterministic symmetric "Laplacian" (dense stand-in for the sparse one).
    a = jax.random.normal(k_lap, (V, V), dtype=jnp.float32)
    lap = 0.05 * (a + a.T)

    params = (
        init_block_params(k_w1, in_channels, middle_channels, kernel_size),
        init_block_params(k_w2, middle_channels, out_channels, kernel_size),
    )

    lap_t = prepare_laplacian(lap)         # one-time, outside the jitted call
    y = spherical_cheb_bn2(x, lap_t, params)
    y = jax.block_until_ready(y)

    assert y.shape == (B, V, out_channels), y.shape
    assert bool(jnp.all(jnp.isfinite(y))) and bool(jnp.all(y >= 0.0))

    # Loose parity check against a pure-JAX f32 reference: the kernel uses
    # bf16 MXU operands and a bf16 inter-block activation, so tolerance is
    # wide; a layout / weight-ordering / BN bug would show up as O(1) error.
    y_ref = _forward_ref(x, lap, params)
    max_err = float(jnp.max(jnp.abs(y - y_ref)))
    assert max_err < 0.25, f"max abs err vs f32 reference: {max_err}"

    print("KERNEL_OK")
</pallas_src>

<mosaic_0001>
module attributes {stable_mosaic.version = 11 : i64} {
  func.func @_cheb_kernel_plain(%arg0: i32, %arg1: memref<128x128xbf16, #tpu.memory_space<vmem>>, %arg2: memref<32x128xf32, #tpu.memory_space<vmem>>, %arg3: memref<16x48xbf16, #tpu.memory_space<vmem>>, %arg4: memref<16x1xf32, #tpu.memory_space<vmem>>, %arg5: memref<32x128xbf16, #tpu.memory_space<vmem>>, %arg6: memref<1x16x1xf32, #tpu.memory_space<vmem>>, %arg7: memref<1x16x1xf32, #tpu.memory_space<vmem>>, %arg8: memref<96x128xbf16, #tpu.memory_space<vmem>>) attributes {dimension_semantics = [#tpu.dimension_semantics<parallel>], iteration_bounds = array<i64: 1>, scalar_prefetch = 0 : i64, scratch_operands = 1 : i64, tpu.core_type = #tpu.core_type<tc>, window_params = [{pipeline_mode = #tpu.pipeline_mode<synchronous>, transform_indices = @transform_0, window_bounds = array<i64: 128, 128>}, {transform_indices = @transform_1, window_bounds = array<i64: 32, 128>}, {pipeline_mode = #tpu.pipeline_mode<synchronous>, transform_indices = @transform_2, window_bounds = array<i64: 16, 48>}, {pipeline_mode = #tpu.pipeline_mode<synchronous>, transform_indices = @transform_3, window_bounds = array<i64: 16, 1>}, {transform_indices = @transform_4, window_bounds = array<i64: 32, 128>}, {transform_indices = @transform_5, window_bounds = array<i64: 1, 16, 1>}, {transform_indices = @transform_6, window_bounds = array<i64: 1, 16, 1>}]} {
    %c0 = arith.constant 0 : index
    %c0_0 = arith.constant 0 : index
    %0 = vector.load %arg1[%c0, %c0_0] : memref<128x128xbf16, #tpu.memory_space<vmem>>, vector<128x128xbf16>
    %c0_1 = arith.constant 0 : index
    %c0_2 = arith.constant 0 : index
    %1 = vector.load %arg2[%c0_1, %c0_2] : memref<32x128xf32, #tpu.memory_space<vmem>>, vector<32x128xf32>
    %2 = vector.extract_strided_slice %1 {offsets = [0, 0], sizes = [16, 128], strides = [1, 1]} : vector<32x128xf32> to vector<16x128xf32>
    %3 = arith.truncf %2 : vector<16x128xf32> to vector<16x128xbf16>
    %c0_3 = arith.constant 0 : index
    %c0_4 = arith.constant 0 : index
    %4 = vector.load %arg8[%c0_3, %c0_4] : memref<96x128xbf16, #tpu.memory_space<vmem>>, vector<16x128xbf16>
    tpu.vector_store %arg8[%c0_3, %c0_4], %3 {strides = array<i32>} : memref<96x128xbf16, #tpu.memory_space<vmem>>, vector<16x128xbf16>,
    %5 = vector.extract_strided_slice %1 {offsets = [16, 0], sizes = [16, 128], strides = [1, 1]} : vector<32x128xf32> to vector<16x128xf32>
    %6 = arith.truncf %5 : vector<16x128xf32> to vector<16x128xbf16>
    %c48 = arith.constant 48 : index
    %c0_5 = arith.constant 0 : index
    %7 = vector.load %arg8[%c48, %c0_5] : memref<96x128xbf16, #tpu.memory_space<vmem>>, vector<16x128xbf16>
    tpu.vector_store %arg8[%c48, %c0_5], %6 {strides = array<i32>} : memref<96x128xbf16, #tpu.memory_space<vmem>>, vector<16x128xbf16>,
    %8 = arith.truncf %1 : vector<32x128xf32> to vector<32x128xbf16>
    %cst = arith.constant dense<0.000000e+00> : vector<32x128xf32>
    %9 = tpu.matmul %8, %0, %cst {dimension_numbers = #tpu.dot_dimension_numbers<[1], [0], [0], [1], [0, 0, 1, 1], [], []>} : vector<32x128xbf16>, vector<128x128xbf16>, vector<32x128xf32> -> vector<32x128xf32>
    %10 = vector.extract_strided_slice %9 {offsets = [0, 0], sizes = [16, 128], strides = [1, 1]} : vector<32x128xf32> to vector<16x128xf32>
    %11 = arith.truncf %10 : vector<16x128xf32> to vector<16x128xbf16>
    %c16 = arith.constant 16 : index
    %c0_6 = arith.constant 0 : index
    %12 = vector.load %arg8[%c16, %c0_6] : memref<96x128xbf16, #tpu.memory_space<vmem>>, vector<16x128xbf16>
    tpu.vector_store %arg8[%c16, %c0_6], %11 {strides = array<i32>} : memref<96x128xbf16, #tpu.memory_space<vmem>>, vector<16x128xbf16>,
    %13 = vector.extract_strided_slice %9 {offsets = [16, 0], sizes = [16, 128], strides = [1, 1]} : vector<32x128xf32> to vector<16x128xf32>
    %14 = arith.truncf %13 : vector<16x128xf32> to vector<16x128xbf16>
    %c64 = arith.constant 64 : index
    %c0_7 = arith.constant 0 : index
    %15 = vector.load %arg8[%c64, %c0_7] : memref<96x128xbf16, #tpu.memory_space<vmem>>, vector<16x128xbf16>
    tpu.vector_store %arg8[%c64, %c0_7], %14 {strides = array<i32>} : memref<96x128xbf16, #tpu.memory_space<vmem>>, vector<16x128xbf16>,
    %16 = arith.truncf %9 : vector<32x128xf32> to vector<32x128xbf16>
    %cst_8 = arith.constant dense<0.000000e+00> : vector<32x128xf32>
    %17 = tpu.matmul %16, %0, %cst_8 {dimension_numbers = #tpu.dot_dimension_numbers<[1], [0], [0], [1], [0, 0, 1, 1], [], []>} : vector<32x128xbf16>, vector<128x128xbf16>, vector<32x128xf32> -> vector<32x128xf32>
    %cst_9 = arith.constant 2.000000e+00 : f32
    %18 = vector.broadcast %cst_9 : f32 to vector<32x128xf32>
    %19 = arith.mulf %18, %17 : vector<32x128xf32>
    %20 = arith.subf %19, %1 : vector<32x128xf32>
    %21 = vector.extract_strided_slice %20 {offsets = [0, 0], sizes = [16, 128], strides = [1, 1]} : vector<32x128xf32> to vector<16x128xf32>
    %22 = arith.truncf %21 : vector<16x128xf32> to vector<16x128xbf16>
    %c32 = arith.constant 32 : index
    %c0_10 = arith.constant 0 : index
    %23 = vector.load %arg8[%c32, %c0_10] : memref<96x128xbf16, #tpu.memory_space<vmem>>, vector<16x128xbf16>
    tpu.vector_store %arg8[%c32, %c0_10], %22 {strides = array<i32>} : memref<96x128xbf16, #tpu.memory_space<vmem>>, vector<16x128xbf16>,
    %24 = vector.extract_strided_slice %20 {offsets = [16, 0], sizes = [16, 128], strides = [1, 1]} : vector<32x128xf32> to vector<16x128xf32>
    %25 = arith.truncf %24 : vector<16x128xf32> to vector<16x128xbf16>
    %c80 = arith.constant 80 : index
    %c0_11 = arith.constant 0 : index
    %26 = vector.load %arg8[%c80, %c0_11] : memref<96x128xbf16, #tpu.memory_space<vmem>>, vector<16x128xbf16>
    tpu.vector_store %arg8[%c80, %c0_11], %25 {strides = array<i32>} : memref<96x128xbf16, #tpu.memory_space<vmem>>, vector<16x128xbf16>,
    %c0_12 = arith.constant 0 : index
    %c0_13 = arith.constant 0 : index
    %27 = vector.load %arg3[%c0_12, %c0_13] : memref<16x48xbf16, #tpu.memory_space<vmem>>, vector<16x48xbf16>
    %c0_14 = arith.constant 0 : index
    %c0_15 = arith.constant 0 : index
    %28 = vector.load %arg4[%c0_14, %c0_15] : memref<16x1xf32, #tpu.memory_space<vmem>>, vector<16x1xf32>
    %cst_16 = arith.constant 0.000000e+00 : f32
    %29 = vector.broadcast %cst_16 : f32 to vector<16x1xf32>
    %cst_17 = arith.constant 0.000000e+00 : f32
    %30 = vector.broadcast %cst_17 : f32 to vector<16x1xf32>
    %c0_18 = arith.constant 0 : index
    %c0_19 = arith.constant 0 : index
    %31 = vector.load %arg8[%c0_18, %c0_19] : memref<96x128xbf16, #tpu.memory_space<vmem>>, vector<48x128xbf16>
    %cst_20 = arith.constant dense<0.000000e+00> : vector<16x128xf32>
    %32 = tpu.matmul %27, %31, %cst_20 {dimension_numbers = #tpu.dot_dimension_numbers<[1], [0], [0], [1], [0, 0, 1, 1], [], []>} : vector<16x48xbf16>, vector<48x128xbf16>, vector<16x128xf32> -> vector<16x128xf32>
    %33 = vector.broadcast %28 : vector<16x1xf32> to vector<16x128xf32>
    %34 = arith.addf %32, %33 : vector<16x128xf32>
    %35 = arith.truncf %34 : vector<16x128xf32> to vector<16x128xbf16>
    %c0_21 = arith.constant 0 : index
    %c0_22 = arith.constant 0 : index
    %36 = vector.load %arg5[%c0_21, %c0_22] : memref<32x128xbf16, #tpu.memory_space<vmem>>, vector<16x128xbf16>
    tpu.vector_store %arg5[%c0_21, %c0_22], %35 {strides = array<i32>} : memref<32x128xbf16, #tpu.memory_space<vmem>>, vector<16x128xbf16>,
    %cst_23 = arith.constant dense<0.000000e+00> : vector<16xf32>
    %37 = vector.multi_reduction <add>, %34, %cst_23 [1] : vector<16x128xf32> to vector<16xf32>
    %38 = vector.shape_cast %37 : vector<16xf32> to vector<16x1xf32>
    %39 = arith.addf %29, %38 : vector<16x1xf32>
    %40 = arith.mulf %34, %34 : vector<16x128xf32>
    %cst_24 = arith.constant dense<0.000000e+00> : vector<16xf32>
    %41 = vector.multi_reduction <add>, %40, %cst_24 [1] : vector<16x128xf32> to vector<16xf32>
    %42 = vector.shape_cast %41 : vector<16xf32> to vector<16x1xf32>
    %43 = arith.addf %30, %42 : vector<16x1xf32>
    %c48_25 = arith.constant 48 : index
    %c0_26 = arith.constant 0 : index
    %44 = vector.load %arg8[%c48_25, %c0_26] : memref<96x128xbf16, #tpu.memory_space<vmem>>, vector<48x128xbf16>
    %cst_27 = arith.constant dense<0.000000e+00> : vector<16x128xf32>
    %45 = tpu.matmul %27, %44, %cst_27 {dimension_numbers = #tpu.dot_dimension_numbers<[1], [0], [0], [1], [0, 0, 1, 1], [], []>} : vector<16x48xbf16>, vector<48x128xbf16>, vector<16x128xf32> -> vector<16x128xf32>
    %46 = vector.broadcast %28 : vector<16x1xf32> to vector<16x128xf32>
    %47 = arith.addf %45, %46 : vector<16x128xf32>
    %48 = arith.truncf %47 : vector<16x128xf32> to vector<16x128xbf16>
    %c16_28 = arith.constant 16 : index
    %c0_29 = arith.constant 0 : index
    %49 = vector.load %arg5[%c16_28, %c0_29] : memref<32x128xbf16, #tpu.memory_space<vmem>>, vector<16x128xbf16>
    tpu.vector_store %arg5[%c16_28, %c0_29], %48 {strides = array<i32>} : memref<32x128xbf16, #tpu.memory_space<vmem>>, vector<16x128xbf16>,
    %cst_30 = arith.constant dense<0.000000e+00> : vector<16xf32>
    %50 = vector.multi_reduction <add>, %47, %cst_30 [1] : vector<16x128xf32> to vector<16xf32>
    %51 = vector.shape_cast %50 : vector<16xf32> to vector<16x1xf32>
    %52 = arith.addf %39, %51 : vector<16x1xf32>
    %53 = arith.mulf %47, %47 : vector<16x128xf32>
    %cst_31 = arith.constant dense<0.000000e+00> : vector<16xf32>
    %54 = vector.multi_reduction <add>, %53, %cst_31 [1] : vector<16x128xf32> to vector<16xf32>
    %55 = vector.shape_cast %54 : vector<16xf32> to vector<16x1xf32>
    %56 = arith.addf %43, %55 : vector<16x1xf32>
    %c0_32 = arith.constant 0 : index
    %c0_33 = arith.constant 0 : index
    %c0_34 = arith.constant 0 : index
    %57 = vector.load %arg6[%c0_32, %c0_33, %c0_34] : memref<1x16x1xf32, #tpu.memory_space<vmem>>, vector<1x16x1xf32>
    %58 = vector.shape_cast %57 : vector<1x16x1xf32> to vector<16x1xf32>
    %59 = vector.shape_cast %52 : vector<16x1xf32> to vector<1x16x1xf32>
    tpu.vector_store %arg6[%c0_32, %c0_33, %c0_34], %59 {strides = array<i32>} : memref<1x16x1xf32, #tpu.memory_space<vmem>>, vector<1x16x1xf32>,
    %c0_35 = arith.constant 0 : index
    %c0_36 = arith.constant 0 : index
    %c0_37 = arith.constant 0 : index
    %60 = vector.load %arg7[%c0_35, %c0_36, %c0_37] : memref<1x16x1xf32, #tpu.memory_space<vmem>>, vector<1x16x1xf32>
    %61 = vector.shape_cast %60 : vector<1x16x1xf32> to vector<16x1xf32>
    %62 = vector.shape_cast %56 : vector<16x1xf32> to vector<1x16x1xf32>
    tpu.vector_store %arg7[%c0_35, %c0_36, %c0_37], %62 {strides = array<i32>} : memref<1x16x1xf32, #tpu.memory_space<vmem>>, vector<1x16x1xf32>,
    return
  }
  func.func @transform_0(%arg0: i32) -> (i32, i32) {
    %c0_i32 = arith.constant 0 : i32
    %c0_i32_0 = arith.constant 0 : i32
    %c0_i32_1 = arith.constant 0 : i32
    return %c0_i32, %c0_i32_0 : i32, i32
  }
  func.func @transform_1(%arg0: i32) -> (i32, i32) {
    %c0_i32 = arith.constant 0 : i32
    %c0_i32_0 = arith.constant 0 : i32
    return %arg0, %c0_i32 : i32, i32
  }
  func.func @transform_2(%arg0: i32) -> (i32, i32) {
    %c0_i32 = arith.constant 0 : i32
    %c0_i32_0 = arith.constant 0 : i32
    %c0_i32_1 = arith.constant 0 : i32
    return %c0_i32, %c0_i32_0 : i32, i32
  }
  func.func @transform_3(%arg0: i32) -> (i32, i32) {
    %c0_i32 = arith.constant 0 : i32
    %c0_i32_0 = arith.constant 0 : i32
    %c0_i32_1 = arith.constant 0 : i32
    return %c0_i32, %c0_i32_0 : i32, i32
  }
  func.func @transform_4(%arg0: i32) -> (i32, i32) {
    %c0_i32 = arith.constant 0 : i32
    %c0_i32_0 = arith.constant 0 : i32
    return %arg0, %c0_i32 : i32, i32
  }
  func.func @transform_5(%arg0: i32) -> (i32, i32, i32) {
    %c0_i32 = arith.constant 0 : i32
    %c0_i32_0 = arith.constant 0 : i32
    %c0_i32_1 = arith.constant 0 : i32
    return %arg0, %c0_i32, %c0_i32_0 : i32, i32, i32
  }
  func.func @transform_6(%arg0: i32) -> (i32, i32, i32) {
    %c0_i32 = arith.constant 0 : i32
    %c0_i32_0 = arith.constant 0 : i32
    %c0_i32_1 = arith.constant 0 : i32
    return %arg0, %c0_i32, %c0_i32_0 : i32, i32, i32
  }
}

module attributes {stable_mosaic.version = 11 : i64} {
  func.func @_cheb_kernel_fused(%arg0: i32, %arg1: memref<128x128xbf16, #tpu.memory_space<vmem>>, %arg2: memref<32x128xbf16, #tpu.memory_space<vmem>>, %arg3: memref<16x48xbf16, #tpu.memory_space<vmem>>, %arg4: memref<16x1xf32, #tpu.memory_space<vmem>>, %arg5: memref<32x1xf32, #tpu.memory_space<vmem>>, %arg6: memref<32x1xf32, #tpu.memory_space<vmem>>, %arg7: memref<32x128xf32, #tpu.memory_space<vmem>>, %arg8: memref<1x16x1xf32, #tpu.memory_space<vmem>>, %arg9: memref<1x16x1xf32, #tpu.memory_space<vmem>>, %arg10: memref<96x128xbf16, #tpu.memory_space<vmem>>) attributes {dimension_semantics = [#tpu.dimension_semantics<parallel>], iteration_bounds = array<i64: 1>, scalar_prefetch = 0 : i64, scratch_operands = 1 : i64, tpu.core_type = #tpu.core_type<tc>, window_params = [{pipeline_mode = #tpu.pipeline_mode<synchronous>, transform_indices = @transform_0, window_bounds = array<i64: 128, 128>}, {transform_indices = @transform_1, window_bounds = array<i64: 32, 128>}, {pipeline_mode = #tpu.pipeline_mode<synchronous>, transform_indices = @transform_2, window_bounds = array<i64: 16, 48>}, {pipeline_mode = #tpu.pipeline_mode<synchronous>, transform_indices = @transform_3, window_bounds = array<i64: 16, 1>}, {pipeline_mode = #tpu.pipeline_mode<synchronous>, transform_indices = @transform_4, window_bounds = array<i64: 32, 1>}, {pipeline_mode = #tpu.pipeline_mode<synchronous>, transform_indices = @transform_5, window_bounds = array<i64: 32, 1>}, {transform_indices = @transform_6, window_bounds = array<i64: 32, 128>}, {transform_indices = @transform_7, window_bounds = array<i64: 1, 16, 1>}, {transform_indices = @transform_8, window_bounds = array<i64: 1, 16, 1>}]} {
    %c0 = arith.constant 0 : index
    %c0_0 = arith.constant 0 : index
    %0 = vector.load %arg1[%c0, %c0_0] : memref<128x128xbf16, #tpu.memory_space<vmem>>, vector<128x128xbf16>
    %c0_1 = arith.constant 0 : index
    %c0_2 = arith.constant 0 : index
    %1 = vector.load %arg2[%c0_1, %c0_2] : memref<32x128xbf16, #tpu.memory_space<vmem>>, vector<32x128xbf16>
    %2 = arith.extf %1 : vector<32x128xbf16> to vector<32x128xf32>
    %c0_3 = arith.constant 0 : index
    %c0_4 = arith.constant 0 : index
    %3 = vector.load %arg5[%c0_3, %c0_4] : memref<32x1xf32, #tpu.memory_space<vmem>>, vector<32x1xf32>
    %4 = vector.broadcast %3 : vector<32x1xf32> to vector<32x128xf32>
    %5 = arith.mulf %2, %4 : vector<32x128xf32>
    %c0_5 = arith.constant 0 : index
    %c0_6 = arith.constant 0 : index
    %6 = vector.load %arg6[%c0_5, %c0_6] : memref<32x1xf32, #tpu.memory_space<vmem>>, vector<32x1xf32>
    %7 = vector.broadcast %6 : vector<32x1xf32> to vector<32x128xf32>
    %8 = arith.addf %5, %7 : vector<32x128xf32>
    %cst = arith.constant 0.000000e+00 : f32
    %9 = vector.broadcast %cst : f32 to vector<32x128xf32>
    %10 = arith.maximumf %8, %9 : vector<32x128xf32>
    %11 = vector.extract_strided_slice %10 {offsets = [0, 0], sizes = [16, 128], strides = [1, 1]} : vector<32x128xf32> to vector<16x128xf32>
    %12 = arith.truncf %11 : vector<16x128xf32> to vector<16x128xbf16>
    %c0_7 = arith.constant 0 : index
    %c0_8 = arith.constant 0 : index
    %13 = vector.load %arg10[%c0_7, %c0_8] : memref<96x128xbf16, #tpu.memory_space<vmem>>, vector<16x128xbf16>
    tpu.vector_store %arg10[%c0_7, %c0_8], %12 {strides = array<i32>} : memref<96x128xbf16, #tpu.memory_space<vmem>>, vector<16x128xbf16>,
    %14 = vector.extract_strided_slice %10 {offsets = [16, 0], sizes = [16, 128], strides = [1, 1]} : vector<32x128xf32> to vector<16x128xf32>
    %15 = arith.truncf %14 : vector<16x128xf32> to vector<16x128xbf16>
    %c48 = arith.constant 48 : index
    %c0_9 = arith.constant 0 : index
    %16 = vector.load %arg10[%c48, %c0_9] : memref<96x128xbf16, #tpu.memory_space<vmem>>, vector<16x128xbf16>
    tpu.vector_store %arg10[%c48, %c0_9], %15 {strides = array<i32>} : memref<96x128xbf16, #tpu.memory_space<vmem>>, vector<16x128xbf16>,
    %17 = arith.truncf %10 : vector<32x128xf32> to vector<32x128xbf16>
    %cst_10 = arith.constant dense<0.000000e+00> : vector<32x128xf32>
    %18 = tpu.matmul %17, %0, %cst_10 {dimension_numbers = #tpu.dot_dimension_numbers<[1], [0], [0], [1], [0, 0, 1, 1], [], []>} : vector<32x128xbf16>, vector<128x128xbf16>, vector<32x128xf32> -> vector<32x128xf32>
    %19 = vector.extract_strided_slice %18 {offsets = [0, 0], sizes = [16, 128], strides = [1, 1]} : vector<32x128xf32> to vector<16x128xf32>
    %20 = arith.truncf %19 : vector<16x128xf32> to vector<16x128xbf16>
    %c16 = arith.constant 16 : index
    %c0_11 = arith.constant 0 : index
    %21 = vector.load %arg10[%c16, %c0_11] : memref<96x128xbf16, #tpu.memory_space<vmem>>, vector<16x128xbf16>
    tpu.vector_store %arg10[%c16, %c0_11], %20 {strides = array<i32>} : memref<96x128xbf16, #tpu.memory_space<vmem>>, vector<16x128xbf16>,
    %22 = vector.extract_strided_slice %18 {offsets = [16, 0], sizes = [16, 128], strides = [1, 1]} : vector<32x128xf32> to vector<16x128xf32>
    %23 = arith.truncf %22 : vector<16x128xf32> to vector<16x128xbf16>
    %c64 = arith.constant 64 : index
    %c0_12 = arith.constant 0 : index
    %24 = vector.load %arg10[%c64, %c0_12] : memref<96x128xbf16, #tpu.memory_space<vmem>>, vector<16x128xbf16>
    tpu.vector_store %arg10[%c64, %c0_12], %23 {strides = array<i32>} : memref<96x128xbf16, #tpu.memory_space<vmem>>, vector<16x128xbf16>,
    %25 = arith.truncf %18 : vector<32x128xf32> to vector<32x128xbf16>
    %cst_13 = arith.constant dense<0.000000e+00> : vector<32x128xf32>
    %26 = tpu.matmul %25, %0, %cst_13 {dimension_numbers = #tpu.dot_dimension_numbers<[1], [0], [0], [1], [0, 0, 1, 1], [], []>} : vector<32x128xbf16>, vector<128x128xbf16>, vector<32x128xf32> -> vector<32x128xf32>
    %cst_14 = arith.constant 2.000000e+00 : f32
    %27 = vector.broadcast %cst_14 : f32 to vector<32x128xf32>
    %28 = arith.mulf %27, %26 : vector<32x128xf32>
    %29 = arith.subf %28, %10 : vector<32x128xf32>
    %30 = vector.extract_strided_slice %29 {offsets = [0, 0], sizes = [16, 128], strides = [1, 1]} : vector<32x128xf32> to vector<16x128xf32>
    %31 = arith.truncf %30 : vector<16x128xf32> to vector<16x128xbf16>
    %c32 = arith.constant 32 : index
    %c0_15 = arith.constant 0 : index
    %32 = vector.load %arg10[%c32, %c0_15] : memref<96x128xbf16, #tpu.memory_space<vmem>>, vector<16x128xbf16>
    tpu.vector_store %arg10[%c32, %c0_15], %31 {strides = array<i32>} : memref<96x128xbf16, #tpu.memory_space<vmem>>, vector<16x128xbf16>,
    %33 = vector.extract_strided_slice %29 {offsets = [16, 0], sizes = [16, 128], strides = [1, 1]} : vector<32x128xf32> to vector<16x128xf32>
    %34 = arith.truncf %33 : vector<16x128xf32> to vector<16x128xbf16>
    %c80 = arith.constant 80 : index
    %c0_16 = arith.constant 0 : index
    %35 = vector.load %arg10[%c80, %c0_16] : memref<96x128xbf16, #tpu.memory_space<vmem>>, vector<16x128xbf16>
    tpu.vector_store %arg10[%c80, %c0_16], %34 {strides = array<i32>} : memref<96x128xbf16, #tpu.memory_space<vmem>>, vector<16x128xbf16>,
    %c0_17 = arith.constant 0 : index
    %c0_18 = arith.constant 0 : index
    %36 = vector.load %arg3[%c0_17, %c0_18] : memref<16x48xbf16, #tpu.memory_space<vmem>>, vector<16x48xbf16>
    %c0_19 = arith.constant 0 : index
    %c0_20 = arith.constant 0 : index
    %37 = vector.load %arg4[%c0_19, %c0_20] : memref<16x1xf32, #tpu.memory_space<vmem>>, vector<16x1xf32>
    %cst_21 = arith.constant 0.000000e+00 : f32
    %38 = vector.broadcast %cst_21 : f32 to vector<16x1xf32>
    %cst_22 = arith.constant 0.000000e+00 : f32
    %39 = vector.broadcast %cst_22 : f32 to vector<16x1xf32>
    %c0_23 = arith.constant 0 : index
    %c0_24 = arith.constant 0 : index
    %40 = vector.load %arg10[%c0_23, %c0_24] : memref<96x128xbf16, #tpu.memory_space<vmem>>, vector<48x128xbf16>
    %cst_25 = arith.constant dense<0.000000e+00> : vector<16x128xf32>
    %41 = tpu.matmul %36, %40, %cst_25 {dimension_numbers = #tpu.dot_dimension_numbers<[1], [0], [0], [1], [0, 0, 1, 1], [], []>} : vector<16x48xbf16>, vector<48x128xbf16>, vector<16x128xf32> -> vector<16x128xf32>
    %42 = vector.broadcast %37 : vector<16x1xf32> to vector<16x128xf32>
    %43 = arith.addf %41, %42 : vector<16x128xf32>
    %c0_26 = arith.constant 0 : index
    %c0_27 = arith.constant 0 : index
    %44 = vector.load %arg7[%c0_26, %c0_27] : memref<32x128xf32, #tpu.memory_space<vmem>>, vector<16x128xf32>
    tpu.vector_store %arg7[%c0_26, %c0_27], %43 {strides = array<i32>} : memref<32x128xf32, #tpu.memory_space<vmem>>, vector<16x128xf32>,
    %cst_28 = arith.constant dense<0.000000e+00> : vector<16xf32>
    %45 = vector.multi_reduction <add>, %43, %cst_28 [1] : vector<16x128xf32> to vector<16xf32>
    %46 = vector.shape_cast %45 : vector<16xf32> to vector<16x1xf32>
    %47 = arith.addf %38, %46 : vector<16x1xf32>
    %48 = arith.mulf %43, %43 : vector<16x128xf32>
    %cst_29 = arith.constant dense<0.000000e+00> : vector<16xf32>
    %49 = vector.multi_reduction <add>, %48, %cst_29 [1] : vector<16x128xf32> to vector<16xf32>
    %50 = vector.shape_cast %49 : vector<16xf32> to vector<16x1xf32>
    %51 = arith.addf %39, %50 : vector<16x1xf32>
    %c48_30 = arith.constant 48 : index
    %c0_31 = arith.constant 0 : index
    %52 = vector.load %arg10[%c48_30, %c0_31] : memref<96x128xbf16, #tpu.memory_space<vmem>>, vector<48x128xbf16>
    %cst_32 = arith.constant dense<0.000000e+00> : vector<16x128xf32>
    %53 = tpu.matmul %36, %52, %cst_32 {dimension_numbers = #tpu.dot_dimension_numbers<[1], [0], [0], [1], [0, 0, 1, 1], [], []>} : vector<16x48xbf16>, vector<48x128xbf16>, vector<16x128xf32> -> vector<16x128xf32>
    %54 = vector.broadcast %37 : vector<16x1xf32> to vector<16x128xf32>
    %55 = arith.addf %53, %54 : vector<16x128xf32>
    %c16_33 = arith.constant 16 : index
    %c0_34 = arith.constant 0 : index
    %56 = vector.load %arg7[%c16_33, %c0_34] : memref<32x128xf32, #tpu.memory_space<vmem>>, vector<16x128xf32>
    tpu.vector_store %arg7[%c16_33, %c0_34], %55 {strides = array<i32>} : memref<32x128xf32, #tpu.memory_space<vmem>>, vector<16x128xf32>,
    %cst_35 = arith.constant dense<0.000000e+00> : vector<16xf32>
    %57 = vector.multi_reduction <add>, %55, %cst_35 [1] : vector<16x128xf32> to vector<16xf32>
    %58 = vector.shape_cast %57 : vector<16xf32> to vector<16x1xf32>
    %59 = arith.addf %47, %58 : vector<16x1xf32>
    %60 = arith.mulf %55, %55 : vector<16x128xf32>
    %cst_36 = arith.constant dense<0.000000e+00> : vector<16xf32>
    %61 = vector.multi_reduction <add>, %60, %cst_36 [1] : vector<16x128xf32> to vector<16xf32>
    %62 = vector.shape_cast %61 : vector<16xf32> to vector<16x1xf32>
    %63 = arith.addf %51, %62 : vector<16x1xf32>
    %c0_37 = arith.constant 0 : index
    %c0_38 = arith.constant 0 : index
    %c0_39 = arith.constant 0 : index
    %64 = vector.load %arg8[%c0_37, %c0_38, %c0_39] : memref<1x16x1xf32, #tpu.memory_space<vmem>>, vector<1x16x1xf32>
    %65 = vector.shape_cast %64 : vector<1x16x1xf32> to vector<16x1xf32>
    %66 = vector.shape_cast %59 : vector<16x1xf32> to vector<1x16x1xf32>
    tpu.vector_store %arg8[%c0_37, %c0_38, %c0_39], %66 {strides = array<i32>} : memref<1x16x1xf32, #tpu.memory_space<vmem>>, vector<1x16x1xf32>,
    %c0_40 = arith.constant 0 : index
    %c0_41 = arith.constant 0 : index
    %c0_42 = arith.constant 0 : index
    %67 = vector.load %arg9[%c0_40, %c0_41, %c0_42] : memref<1x16x1xf32, #tpu.memory_space<vmem>>, vector<1x16x1xf32>
    %68 = vector.shape_cast %67 : vector<1x16x1xf32> to vector<16x1xf32>
    %69 = vector.shape_cast %63 : vector<16x1xf32> to vector<1x16x1xf32>
    tpu.vector_store %arg9[%c0_40, %c0_41, %c0_42], %69 {strides = array<i32>} : memref<1x16x1xf32, #tpu.memory_space<vmem>>, vector<1x16x1xf32>,
    return
  }
  func.func @transform_0(%arg0: i32) -> (i32, i32) {
    %c0_i32 = arith.constant 0 : i32
    %c0_i32_0 = arith.constant 0 : i32
    %c0_i32_1 = arith.constant 0 : i32
    return %c0_i32, %c0_i32_0 : i32, i32
  }
  func.func @transform_1(%arg0: i32) -> (i32, i32) {
    %c0_i32 = arith.constant 0 : i32
    %c0_i32_0 = arith.constant 0 : i32
    return %arg0, %c0_i32 : i32, i32
  }
  func.func @transform_2(%arg0: i32) -> (i32, i32) {
    %c0_i32 = arith.constant 0 : i32
    %c0_i32_0 = arith.constant 0 : i32
    %c0_i32_1 = arith.constant 0 : i32
    return %c0_i32, %c0_i32_0 : i32, i32
  }
  func.func @transform_3(%arg0: i32) -> (i32, i32) {
    %c0_i32 = arith.constant 0 : i32
    %c0_i32_0 = arith.constant 0 : i32
    %c0_i32_1 = arith.constant 0 : i32
    return %c0_i32, %c0_i32_0 : i32, i32
  }
  func.func @transform_4(%arg0: i32) -> (i32, i32) {
    %c0_i32 = arith.constant 0 : i32
    %c0_i32_0 = arith.constant 0 : i32
    %c0_i32_1 = arith.constant 0 : i32
    return %c0_i32, %c0_i32_0 : i32, i32
  }
  func.func @transform_5(%arg0: i32) -> (i32, i32) {
    %c0_i32 = arith.constant 0 : i32
    %c0_i32_0 = arith.constant 0 : i32
    %c0_i32_1 = arith.constant 0 : i32
    return %c0_i32, %c0_i32_0 : i32, i32
  }
  func.func @transform_6(%arg0: i32) -> (i32, i32) {
    %c0_i32 = arith.constant 0 : i32
    %c0_i32_0 = arith.constant 0 : i32
    return %arg0, %c0_i32 : i32, i32
  }
  func.func @transform_7(%arg0: i32) -> (i32, i32, i32) {
    %c0_i32 = arith.constant 0 : i32
    %c0_i32_0 = arith.constant 0 : i32
    %c0_i32_1 = arith.constant 0 : i32
    return %arg0, %c0_i32, %c0_i32_0 : i32, i32, i32
  }
  func.func @transform_8(%arg0: i32) -> (i32, i32, i32) {
    %c0_i32 = arith.constant 0 : i32
    %c0_i32_0 = arith.constant 0 : i32
    %c0_i32_1 = arith.constant 0 : i32
    return %arg0, %c0_i32, %c0_i32_0 : i32, i32, i32
  }
}

module attributes {stable_mosaic.version = 11 : i64} {
  func.func @bn_relu_transpose_kernel(%arg0: i32, %arg1: memref<16x128xf32, #tpu.memory_space<vmem>>, %arg2: memref<16x1xf32, #tpu.memory_space<vmem>>, %arg3: memref<16x1xf32, #tpu.memory_space<vmem>>, %arg4: memref<1x128x6xf32, #tpu.memory_space<vmem>>) attributes {dimension_semantics = [#tpu.dimension_semantics<parallel>], iteration_bounds = array<i64: 2>, scalar_prefetch = 0 : i64, scratch_operands = 0 : i64, tpu.core_type = #tpu.core_type<tc>, window_params = [{transform_indices = @transform_0, window_bounds = array<i64: 16, 128>}, {pipeline_mode = #tpu.pipeline_mode<synchronous>, transform_indices = @transform_1, window_bounds = array<i64: 16, 1>}, {pipeline_mode = #tpu.pipeline_mode<synchronous>, transform_indices = @transform_2, window_bounds = array<i64: 16, 1>}, {transform_indices = @transform_3, window_bounds = array<i64: 1, 128, 6>}]} {
    %c0 = arith.constant 0 : index
    %c0_0 = arith.constant 0 : index
    %0 = vector.load %arg1[%c0, %c0_0] : memref<16x128xf32, #tpu.memory_space<vmem>>, vector<16x128xf32>
    %c0_1 = arith.constant 0 : index
    %c0_2 = arith.constant 0 : index
    %1 = vector.load %arg2[%c0_1, %c0_2] : memref<16x1xf32, #tpu.memory_space<vmem>>, vector<16x1xf32>
    %2 = vector.broadcast %1 : vector<16x1xf32> to vector<16x128xf32>
    %3 = arith.mulf %0, %2 : vector<16x128xf32>
    %c0_3 = arith.constant 0 : index
    %c0_4 = arith.constant 0 : index
    %4 = vector.load %arg3[%c0_3, %c0_4] : memref<16x1xf32, #tpu.memory_space<vmem>>, vector<16x1xf32>
    %5 = vector.broadcast %4 : vector<16x1xf32> to vector<16x128xf32>
    %6 = arith.addf %3, %5 : vector<16x128xf32>
    %cst = arith.constant 0.000000e+00 : f32
    %7 = vector.broadcast %cst : f32 to vector<16x128xf32>
    %8 = arith.maximumf %6, %7 : vector<16x128xf32>
    %9 = tpu.transpose %8, [1, 0] : vector<16x128xf32> -> vector<128x16xf32>
    %10 = vector.extract_strided_slice %9 {offsets = [0, 0], sizes = [128, 6], strides = [1, 1]} : vector<128x16xf32> to vector<128x6xf32>
    %c0_5 = arith.constant 0 : index
    %c0_6 = arith.constant 0 : index
    %c0_7 = arith.constant 0 : index
    %11 = vector.load %arg4[%c0_5, %c0_6, %c0_7] : memref<1x128x6xf32, #tpu.memory_space<vmem>>, vector<1x128x6xf32>
    %12 = vector.shape_cast %11 : vector<1x128x6xf32> to vector<128x6xf32>
    %13 = vector.shape_cast %10 : vector<128x6xf32> to vector<1x128x6xf32>
    tpu.vector_store %arg4[%c0_5, %c0_6, %c0_7], %13 {strides = array<i32>} : memref<1x128x6xf32, #tpu.memory_space<vmem>>, vector<1x128x6xf32>,
    return
  }
  func.func @transform_0(%arg0: i32) -> (i32, i32) {
    %c0_i32 = arith.constant 0 : i32
    %c0_i32_0 = arith.constant 0 : i32
    return %arg0, %c0_i32 : i32, i32
  }
  func.func @transform_1(%arg0: i32) -> (i32, i32) {
    %c0_i32 = arith.constant 0 : i32
    %c0_i32_0 = arith.constant 0 : i32
    %c0_i32_1 = arith.constant 0 : i32
    return %c0_i32, %c0_i32_0 : i32, i32
  }
  func.func @transform_2(%arg0: i32) -> (i32, i32) {
    %c0_i32 = arith.constant 0 : i32
    %c0_i32_0 = arith.constant 0 : i32
    %c0_i32_1 = arith.constant 0 : i32
    return %c0_i32, %c0_i32_0 : i32, i32
  }
  func.func @transform_3(%arg0: i32) -> (i32, i32, i32) {
    %c0_i32 = arith.constant 0 : i32
    %c0_i32_0 = arith.constant 0 : i32
    %c0_i32_1 = arith.constant 0 : i32
    return %arg0, %c0_i32, %c0_i32_0 : i32, i32, i32
  }
}

</mosaic_0001>

<bundles_post_ra>
// kernel: spherical_cheb_bn2.5
= control target key start
LH: loop header
LB: loop body
LE: loop exit
PB: predicated region body
PF: predicated region fallthrough
CT: control target
= control target key end

     0   :  { %s362_s12 = smov 0   ;;  %s430_s0 = inlined_call_operand.vmem [shape: f32[32,128], index: 0, kind: input, shape index: {}]   ;;  %s431_s1 = inlined_call_operand.vmem [shape: f32[16,1], index: 1, kind: input, shape index: {}]   ;;  %s432_s2 = inlined_call_operand.vmem [shape: f32[16,1], index: 2, kind: input, shape index: {}]   ;;  %s433_s3 = inlined_call_operand.vmem [shape: f32[2,128,6], index: 3, kind: output, shape index: {}]  }
   0x1 LB: > { %s368_s13 = sadd.s32 4294967295, %s339_s12   ;;  %p313_p0 = scmp.ge.s32.totalorder %s339_s12, 1  ;;  %s339_s12 = sphi %s362_s12, %s13_s12  }
   0x2   : > { %p138_p1 = scmp.lt.s32.totalorder %s339_s12, 3 }
   0x4   : > { %p139_p2 = pnand %p313_p0, %p138_p1 }
   0x5   : > { %s314_s22 = sshll.u32 (!%p139_p2), %s368_s13, 1  ;;  %p168_p4 = scmp.lt.s32.totalorder (!%p139_p2), %s368_s13, 1 }
   0x6   : > { %142 = sbr.rel (%p139_p2) target bundleno = 415 (0x19f), region = 32  ;;  %p163_p3 = scmp.lt.s32.totalorder (!%p139_p2), %s314_s22, 3 }
   0xb   : > { %v176_v0 = vld [vmem:[%s431_s1 + $0x8] sm:$0xff]  ;;  %v175_v1 = vld [vmem:[%s431_s1] sm:$0xff]  ;;  %v341_v2 = vmov 0   ;;  %s435_s22 = smov (!%p163_p3, %s314_s22), 3  ;;  %s437_s13 = smov (!%p168_p4, %s368_s13), 1  ;;  %vm237_vm0 = vcmask 48128  }
   0xc   : > { %332 = vset.pattern.permute.xlu1 %v341_v2  ;;  %331 = vset.pattern.permute.xlu0 %v341_v2  ;;  %v190_v3 = vld [vmem:[%s432_s2 + $0x8] sm:$0xff]  ;;  %v189_v4 = vld [vmem:[%s432_s2] sm:$0xff]  ;;  %s315_s23 = sshll.u32 %s435_s22, 3  ;;  %s320_s27 = sshll.u32 %s437_s13, 7 }
   0xd   : > { %184 = vperm.xlu1 %332, %v176_v0   ;;  %179 = vperm.xlu0 %331, %v175_v1   ;;  %s166_s26 = scalar_lea.vmem %s430_s0, %s315_s23  ;;  %s393_s30 = scalar_lea.vmem %s433_s3, %s320_s27 }
   0xe   : > { %v173_v7 = vld [vmem:[%s166_s26] sm:$0xff]  ;;  %v174_v9 = vld [vmem:[%s166_s26 + $0x8] sm:$0xff] }
  0x15   : > { %198 = vperm.xlu1 %332, %v190_v3   ;;  %193 = vperm.xlu0 %331, %v189_v4  }
  0x7f   : > { %v180_v5 = vpop.permute.xlu0 %179  ;;  %v185_v6 = vpop.permute.xlu1 %184 }
  0x80   : > { %v187_v8 = vmul.f32 %v180_v5, %v173_v7  ;;  %v188_v12 = vmul.f32 %v185_v6, %v174_v9 }
  0x87   : > { %v194_v10 = vpop.permute.xlu0 %193  ;;  %v199_v14 = vpop.permute.xlu1 %198 }
  0x88   : > { %v201_v11 = vadd.f32 %v194_v10, %v187_v8  ;;  %v202_v15 = vadd.f32 %v199_v14, %v188_v12 }
  0x8a   : > { %v203_v13 = vmax.f32 %v201_v11, 0.0  ;;  %v204_v16 = vmax.f32 %v202_v15, 0.0 }
  0x8c   : > { %205 = vxpose.xlu2.b32.start [1/2] (short) %v203_v13, 128 }
  0x94   : > { %206 = vxpose.xlu2.b32.end [2/2] (short) %v204_v16, 128 }
 0x125   : > { %v221_v17 = vpop.trf.xlu2 }
 0x126   : > { %238 = vst.msk [vmem:[%s393_s30] sm:$0xff] %vm237_vm0, %v221_v17 }
 0x12d   : > { %v222_v18 = vpop.trf.xlu2 }
 0x12e   : > { %239 = vst.msk [vmem:[%s393_s30 + $0x8] sm:$0xff] %vm237_vm0, %v222_v18 }
 0x135   : > { %v223_v19 = vpop.trf.xlu2 }
 0x136   : > { %240 = vst.msk [vmem:[%s393_s30 + $0x10] sm:$0xff] %vm237_vm0, %v223_v19 }
 0x13d   : > { %v224_v20 = vpop.trf.xlu2 }
 0x13e   : > { %241 = vst.msk [vmem:[%s393_s30 + $0x18] sm:$0xff] %vm237_vm0, %v224_v20 }
 0x145   : > { %v225_v21 = vpop.trf.xlu2 }
 0x146   : > { %242 = vst.msk [vmem:[%s393_s30 + $0x20] sm:$0xff] %vm237_vm0, %v225_v21 }
 0x14d   : > { %v226_v22 = vpop.trf.xlu2 }
 0x14e   : > { %243 = vst.msk [vmem:[%s393_s30 + $0x28] sm:$0xff] %vm237_vm0, %v226_v22 }
 0x155   : > { %v227_v23 = vpop.trf.xlu2 }
 0x156   : > { %244 = vst.msk [vmem:[%s393_s30 + $0x30] sm:$0xff] %vm237_vm0, %v227_v23 }
 0x15d   : > { %v228_v24 = vpop.trf.xlu2 }
 0x15e   : > { %245 = vst.msk [vmem:[%s393_s30 + $0x38] sm:$0xff] %vm237_vm0, %v228_v24 }
 0x165   : > { %v229_v25 = vpop.trf.xlu2 }
 0x166   : > { %246 = vst.msk [vmem:[%s393_s30 + $0x40] sm:$0xff] %vm237_vm0, %v229_v25 }
 0x16d   : > { %v230_v26 = vpop.trf.xlu2 }
 0x16e   : > { %247 = vst.msk [vmem:[%s393_s30 + $0x48] sm:$0xff] %vm237_vm0, %v230_v26 }
 0x175   : > { %v231_v27 = vpop.trf.xlu2 }
 0x176   : > { %248 = vst.msk [vmem:[%s393_s30 + $0x50] sm:$0xff] %vm237_vm0, %v231_v27 }
 0x17d   : > { %v232_v28 = vpop.trf.xlu2 }
 0x17e   : > { %249 = vst.msk [vmem:[%s393_s30 + $0x58] sm:$0xff] %vm237_vm0, %v232_v28 }
 0x185   : > { %v233_v29 = vpop.trf.xlu2 }
 0x186   : > { %250 = vst.msk [vmem:[%s393_s30 + $0x60] sm:$0xff] %vm237_vm0, %v233_v29 }
 0x18d   : > { %v234_v30 = vpop.trf.xlu2 }
 0x18e   : > { %251 = vst.msk [vmem:[%s393_s30 + $0x68] sm:$0xff] %vm237_vm0, %v234_v30 }
 0x195   : > { %v235_v31 = vpop.trf.xlu2 }
 0x196   : > { %252 = vst.msk [vmem:[%s393_s30 + $0x70] sm:$0xff] %vm237_vm0, %v235_v31 }
 0x19d   : > { %v236_v32 = vpop.trf.xlu2 }
 0x19e   : > { %253 = vst.msk [vmem:[%s393_s30 + $0x78] sm:$0xff] %vm237_vm0, %v236_v32 }
 0x19f PF: > { %s13_s12 = sadd.s32 1, %s339_s12  }
 0x1a0   : > { %p10_p5 = scmp.ge.s32.totalorder %s13_s12, 4  }
 0x1a2   :  { %12 = sbr.rel (!%p10_p5) target bundleno = 1 (0x1), region = 62 }

// kernel: spherical_cheb_bn2.3
= control target key start
LH: loop header
LB: loop body
LE: loop exit
PB: predicated region body
PF: predicated region fallthrough
CT: control target
= control target key end

     0   :  { %v440_v28 = vmov 0   ;;  %vm206_vm0 = vcmask 392192   ;;  %vm298_vm1 = vcmask 7168   ;;  %s547_s0 = inlined_call_operand.vmem [shape: bf16[128,128], index: 0, kind: input, shape index: {}]   ;;  %s548_s1 = inlined_call_operand.vmem [shape: f32[32,128], index: 1, kind: input, shape index: {}]   ;;  %s549_s3 = inlined_call_operand.vmem [shape: f32[16,1], index: 3, kind: input, shape index: {}]   ;;  %s550_s2 = inlined_call_operand.vmem [shape: bf16[16,48], index: 2, kind: input, shape index: {}]   ;;  %s551_s4 = inlined_call_operand.vmem [shape: bf16[32,128], index: 4, kind: output, shape index: {0}]   ;;  %s552_s5 = inlined_call_operand.vmem [shape: f32[1,16,1], index: 5, kind: output, shape index: {1}]   ;;  %s553_s6 = inlined_call_operand.vmem [shape: f32[1,16,1], index: 6, kind: output, shape index: {2}]  }
   0x1   :  { %v384_v0 = vld [vmem:[%s547_s0 + $0x38] sm:$0xff]  ;;  %v383_v1 = vld [vmem:[%s547_s0 + $0x30] sm:$0xff]  ;;  %v37_v2 = vld [vmem:[%s548_s1] sm:$0xff]  ;;  %439 = vset.pattern.permute.xlu0 %v440_v28 }
   0x2   :  { %99 = vmatpush.bf16.msra.mxu0 %v384_v0  ;;  %128 = vmatpush.bf16.msra.mxu1 %v384_v0  ;;  %v38_v3 = vld [vmem:[%s548_s1 + $0x8] sm:$0xff]  ;;  %v491_v4 = vld [vmem:[%s548_s1 + $0x10] sm:$0xff]  ;;  %v496_v5 = vld [vmem:[%s548_s1 + $0x18] sm:$0xff] }
   0x3   :  { %v395_v6 = vpack.c.bf16 %v38_v3, %v37_v2  ;;  %v400_v7 = vpack.c.bf16 %v496_v5, %v491_v4  ;;  %v382_v8 = vld [vmem:[%s547_s0 + $0x28] sm:$0xff]  ;;  %v381_v9 = vld [vmem:[%s547_s0 + $0x20] sm:$0xff]  ;;  %v380_v10 = vld [vmem:[%s547_s0 + $0x18] sm:$0xff] }
   0x4   :  { %v379_v11 = vld [vmem:[%s547_s0 + $0x10] sm:$0xff]  ;;  %v378_v12 = vld [vmem:[%s547_s0 + $0x8] sm:$0xff]  ;;  %v377_v13 = vld [vmem:[%s547_s0] sm:$0xff] }
   0x5   :  { %396 = vst [vmem:[#allocation2 + $0x28] sm:$0xff] %v395_v6   ;;  %v165_v29 = vld [vmem:[%s549_s3] sm:$0xff]  ;;  %v166_v34 = vld [vmem:[%s549_s3 + $0x8] sm:$0xff] }
   0x6   :  { %100 = vmatpush.bf16.msra.mxu0 %v383_v1  ;;  %129 = vmatpush.bf16.msra.mxu1 %v383_v1  ;;  %432 = vst [vmem:[#allocation2 + $0x8] sm:$0xff] %v400_v7   ;;  %v385_v40 = vld [vmem:[%s550_s2] sm:$0xff] }
   0x7   :  { %175 = vperm.xlu0 %439, %v165_v29  }
   0xa   :  { %101 = vmatpush.bf16.msra.mxu0 %v382_v8  ;;  %130 = vmatpush.bf16.msra.mxu1 %v382_v8 }
   0xc   :  { %v386_v38 = vld [vmem:[#allocation2 + $0x28] sm:$0xff] }
   0xd   :  { %v389_v43 = vld [vmem:[#allocation2 + $0x8] sm:$0xff] }
   0xe   :  { %102 = vmatpush.bf16.msra.mxu0 %v381_v9  ;;  %131 = vmatpush.bf16.msra.mxu1 %v381_v9 }
   0xf   :  { %180 = vperm.xlu0 %439, %v166_v34  }
  0x12   :  { %103 = vmatpush.bf16.msra.mxu0 %v380_v10  ;;  %132 = vmatpush.bf16.msra.mxu1 %v380_v10 }
  0x16   :  { %104 = vmatpush.bf16.msra.mxu0 %v379_v11  ;;  %133 = vmatpush.bf16.msra.mxu1 %v379_v11 }
  0x1a   :  { %105 = vmatpush.bf16.msra.mxu0 %v378_v12  ;;  %134 = vmatpush.bf16.msra.mxu1 %v378_v12 }
  0x1e   :  { %106 = vmatpush.bf16.msra.mxu0 %v377_v13  ;;  %135 = vmatpush.bf16.msra.mxu1 %v377_v13 }
  0x21   :  { %107 = vmatmul.bf16.vlgmr.msra.gmra.mxu0 %v395_v6 }
  0x31   :  { %112 = vmatmul.bf16.gmra.mxu0 %v400_v7 }
  0x79   :  { %v176_v44 = vpop.permute.xlu0 %175 }
  0x81   :  { %v181_v48 = vpop.permute.xlu0 %180 }
  0x9e   :  { %v108_v14 = vpop.f32.mrf.mxu0 }
  0xa6   :  { %v110_v15 = vpop.f32.mrf.mxu0 }
  0xa7   :  { %v405_v16 = vpack.c.bf16 %v110_v15, %v108_v14 }
  0xa9   :  { %433 = vst [vmem:[#allocation2 + $0x18] sm:$0xff] %v405_v16   ;;  %136 = vmatmul.bf16.vlgmr.msra.gmra.mxu1 %v405_v16 }
  0xae   :  { %v113_v17 = vpop.f32.mrf.mxu0 }
  0xb0   :  { %v387_v35 = vld [vmem:[#allocation2 + $0x18] sm:$0xff] }
  0xb6   :  { %v115_v18 = vpop.f32.mrf.mxu0 }
  0xb7   :  { %v410_v19 = vpack.c.bf16 %v115_v18, %v113_v17 }
  0xb9   :  { %434 = vst [vmem:[#allocation2] sm:$0xff] %v410_v19   ;;  %141 = vmatmul.bf16.gmra.mxu1 %v410_v19 }
  0xc0   :  { %v390_v42 = vld [vmem:[#allocation2] sm:$0xff] }
 0x126   :  { %v137_v20 = vpop.f32.mrf.mxu1 }
 0x127   :  { %v147_v21 = vmul.f32 2.0, %v137_v20 }
 0x129   :  { %v151_v24 = vsub.f32 %v147_v21, %v37_v2 }
 0x12e   :  { %v139_v22 = vpop.f32.mrf.mxu1 }
 0x12f   :  { %v148_v23 = vmul.f32 2.0, %v139_v22 }
 0x131   :  { %v152_v25 = vsub.f32 %v148_v23, %v38_v3 }
 0x133   :  { %v415_v26 = vpack.c.bf16 %v152_v25, %v151_v24 }
 0x135   :  { %435 = vst [vmem:[#allocation2 + $0x20] sm:$0xff] %v415_v26  }
 0x136   :  { %v142_v27 = vpop.f32.mrf.mxu1 }
 0x137   :  { %v149_v31 = vmul.f32 2.0, %v142_v27 }
 0x139   :  { %v153_v36 = vsub.f32 %v149_v31, %v491_v4 }
 0x13c   :  { %v388_v30 = vld [vmem:[#allocation2 + $0x20] sm:$0xff] }
 0x13d   :  { %215 = vmatpush.bf16.msra.mxu2 %v388_v30 }
 0x13e   :  { %v144_v32 = vpop.f32.mrf.mxu1 }
 0x13f   :  { %v150_v33 = vmul.f32 2.0, %v144_v32 }
 0x141   :  { %v154_v37 = vsub.f32 %v150_v33, %v496_v5  ;;  %216 = vmatpush.bf16.msra.mxu2 %v387_v35 }
 0x143   :  { %v420_v39 = vpack.c.bf16 %v154_v37, %v153_v36 }
 0x145   :  { %436 = vst [vmem:[#allocation2 + $0x10] sm:$0xff] %v420_v39   ;;  %217 = vmatpush.bf16.msra.mxu2 %v386_v38 }
 0x148   :  { %363 = vmatmul.msk.bf16.vlgmr.msra.gmra.mxu2 %vm206_vm0, %v385_v40 }
 0x14c   :  { %v391_v41 = vld [vmem:[#allocation2 + $0x10] sm:$0xff] }
 0x14d   :  { %271 = vmatpush.bf16.msra.mxu3 %v391_v41 }
 0x151   :  { %272 = vmatpush.bf16.msra.mxu3 %v390_v42 }
 0x155   :  { %273 = vmatpush.bf16.msra.mxu3 %v389_v43 }
 0x158   :  { %376 = vmatmul.msk.bf16.vlgmr.msra.gmra.mxu3 %vm206_vm0, %v385_v40 }
 0x1cb   :  { %v219_v45 = vpop.f32.mrf.mxu2 }
 0x1cc   :  { %v220_v46 = vadd.f32 %v219_v45, %v176_v44 }
 0x1ce   :  { %228 = vadd.xlane.f32.xlu1 %v220_v46  ;;  %v234_v47 = vmul.f32 %v220_v46, %v220_v46 }
 0x1d0   :  { %236 = vadd.xlane.f32.xlu2 %v234_v47 }
 0x1d3   :  { %v221_v49 = vpop.f32.mrf.mxu2 }
 0x1d4   :  { %v222_v50 = vadd.f32 %v221_v49, %v181_v48 }
 0x1d6   :  { %v425_v51 = vpack.c.bf16 %v222_v50, %v220_v46  ;;  %230 = vadd.xlane.f32.xlu1 %v222_v50  ;;  %v235_v52 = vmul.f32 %v222_v50, %v222_v50 }
 0x1d8   :  { %426 = vst [vmem:[%s551_s4] sm:$0xff] %v425_v51   ;;  %238 = vadd.xlane.f32.xlu2 %v235_v52 }
 0x1db   :  { %v275_v53 = vpop.f32.mrf.mxu3 }
 0x1dc   :  { %v276_v54 = vadd.f32 %v275_v53, %v176_v44 }
 0x1de   :  { %284 = vadd.xlane.f32.xlu0 %v276_v54  ;;  %v290_v55 = vmul.f32 %v276_v54, %v276_v54 }
 0x1e0   :  { %292 = vadd.xlane.f32.xlu2 %v290_v55 }
 0x1e3   :  { %v277_v56 = vpop.f32.mrf.mxu3 }
 0x1e4   :  { %v278_v57 = vadd.f32 %v277_v56, %v181_v48 }
 0x1e6   :  { %v430_v58 = vpack.c.bf16 %v278_v57, %v276_v54  ;;  %286 = vadd.xlane.f32.xlu1 %v278_v57  ;;  %v291_v59 = vmul.f32 %v278_v57, %v278_v57 }
 0x1e8   :  { %437 = vst [vmem:[%s551_s4 + $0x8] sm:$0xff] %v430_v58  }
 0x1ee   :  { %294 = vadd.xlane.f32.xlu1 %v291_v59 }
 0x241   :  { %v229_v61 = vpop.xlane.xlu1 %228 }
 0x243   :  { %v237_v60 = vpop.xlane.xlu2 %236 }
 0x249   :  { %v231_v63 = vpop.xlane.xlu1 %230 }
 0x24b   :  { %v239_v62 = vpop.xlane.xlu2 %238 }
 0x251   :  { %v285_v0 = vpop.xlane.xlu0 %284 }
 0x252   :  { %v288_v1 = vadd.f32 %v285_v0, %v229_v61 }
 0x253   :  { %v293_v2 = vpop.xlane.xlu2 %292 }
 0x254   :  { %299 = vst.msk [vmem:[%s552_s5] sm:$0xff] %vm298_vm1, %v288_v1  ;;  %v296_v3 = vadd.f32 %v293_v2, %v237_v60 }
 0x256   :  { %301 = vst.msk [vmem:[%s553_s6] sm:$0xff] %vm298_vm1, %v296_v3 }
 0x259   :  { %v287_v4 = vpop.xlane.xlu1 %286 }
 0x25a   :  { %v289_v5 = vadd.f32 %v287_v4, %v231_v63 }
 0x25c   :  { %300 = vst.msk [vmem:[%s552_s5 + $0x8] sm:$0xff] %vm298_vm1, %v289_v5 }
 0x261   :  { %v295_v6 = vpop.xlane.xlu1 %294 }
 0x262   :  { %v297_v7 = vadd.f32 %v295_v6, %v239_v62 }
 0x264   :  { %302 = vst.msk [vmem:[%s553_s6 + $0x8] sm:$0xff] %vm298_vm1, %v297_v7 }

// kernel: spherical_cheb_bn2.4
= control target key start
LH: loop header
LB: loop body
LE: loop exit
PB: predicated region body
PF: predicated region fallthrough
CT: control target
= control target key end

     0   :  { %v506_v0 = vmov 0   ;;  %vm276_vm0 = vcmask 392192   ;;  %vm364_vm1 = vcmask 7168   ;;  %s639_s5 = inlined_call_operand.vmem [shape: f32[32,1], index: 5, kind: input, shape index: {}]   ;;  %s640_s4 = inlined_call_operand.vmem [shape: f32[32,1], index: 4, kind: input, shape index: {}]   ;;  %s641_s0 = inlined_call_operand.vmem [shape: bf16[128,128], index: 0, kind: input, shape index: {}]   ;;  %s642_s3 = inlined_call_operand.vmem [shape: f32[16,1], index: 3, kind: input, shape index: {}]   ;;  %s643_s1 = inlined_call_operand.vmem [shape: bf16[32,128], index: 1, kind: input, shape index: {}]   ;;  %s644_s2 = inlined_call_operand.vmem [shape: bf16[16,48], index: 2, kind: input, shape index: {}]   ;;  %s645_s6 = inlined_call_operand.vmem [shape: f32[32,128], index: 6, kind: output, shape index: {0}]   ;;  %s646_s7 = inlined_call_operand.vmem [shape: f32[1,16,1], index: 7, kind: output, shape index: {1}]   ;;  %s647_s8 = inlined_call_operand.vmem [shape: f32[1,16,1], index: 8, kind: output, shape index: {2}]  }
   0x1   :  { %504 = vset.pattern.permute.xlu1 %v506_v0  ;;  %503 = vset.pattern.permute.xlu0 %v506_v0  ;;  %v79_v1 = vld [vmem:[%s639_s5] sm:$0xff]  ;;  %v53_v3 = vld [vmem:[%s640_s4 + $0x10] sm:$0xff]  ;;  %v450_v4 = vld [vmem:[%s641_s0 + $0x38] sm:$0xff] }
   0x2   :  { %v51_v2 = vld [vmem:[%s640_s4] sm:$0xff]  ;;  %85 = vperm.xlu1 %504, %v79_v1   ;;  %505 = vset.pattern.permute.xlu2 %v506_v0  ;;  %v80_v5 = vld [vmem:[%s639_s5 + $0x8] sm:$0xff]  ;;  %v449_v7 = vld [vmem:[%s641_s0 + $0x30] sm:$0xff] }
   0x3   :  { %57 = vperm.xlu0 %503, %v51_v2   ;;  %67 = vperm.xlu2 %505, %v53_v3   ;;  %v52_v6 = vld [vmem:[%s640_s4 + $0x8] sm:$0xff]  ;;  %v54_v8 = vld [vmem:[%s640_s4 + $0x18] sm:$0xff]  ;;  %v81_v11 = vld [vmem:[%s639_s5 + $0x10] sm:$0xff] }
   0x4   :  { %169 = vmatpush.bf16.msra.mxu0 %v450_v4  ;;  %198 = vmatpush.bf16.msra.mxu1 %v450_v4  ;;  %v448_v9 = vld [vmem:[%s641_s0 + $0x28] sm:$0xff]  ;;  %v82_v10 = vld [vmem:[%s639_s5 + $0x18] sm:$0xff]  ;;  %v447_v12 = vld [vmem:[%s641_s0 + $0x20] sm:$0xff] }
   0x5   :  { %v235_v13 = vld [vmem:[%s642_s3] sm:$0xff]  ;;  %v236_v14 = vld [vmem:[%s642_s3 + $0x8] sm:$0xff]  ;;  %v446_v15 = vld [vmem:[%s641_s0 + $0x18] sm:$0xff] }
   0x6   :  { %v445_v16 = vld [vmem:[%s641_s0 + $0x10] sm:$0xff]  ;;  %v444_v17 = vld [vmem:[%s641_s0 + $0x8] sm:$0xff]  ;;  %v443_v18 = vld [vmem:[%s641_s0] sm:$0xff] }
   0x7   :  { %v459_v19 = vld [vmem:[%s643_s1] sm:$0xff]   ;;  %v496_v26 = vld [vmem:[%s643_s1 + $0x8] sm:$0xff]  }
   0x8   :  { %170 = vmatpush.bf16.msra.mxu0 %v449_v7  ;;  %199 = vmatpush.bf16.msra.mxu1 %v449_v7  ;;  %v460_v22 = vunpack.c.l.bf16 %v459_v19  ;;  %v461_v25 = vunpack.c.h.bf16 %v459_v19  ;;  %v464_v29 = vunpack.c.l.bf16 %v496_v26  ;;  %v465_v31 = vunpack.c.h.bf16 %v496_v26 }
   0xa   :  { %90 = vperm.xlu1 %504, %v80_v5  }
   0xb   :  { %62 = vperm.xlu0 %503, %v52_v6   ;;  %72 = vperm.xlu2 %505, %v54_v8   ;;  %v451_v6 = vld [vmem:[%s644_s2] sm:$0xff] }
   0xc   :  { %171 = vmatpush.bf16.msra.mxu0 %v448_v9  ;;  %200 = vmatpush.bf16.msra.mxu1 %v448_v9 }
  0x10   :  { %172 = vmatpush.bf16.msra.mxu0 %v447_v12  ;;  %201 = vmatpush.bf16.msra.mxu1 %v447_v12 }
  0x12   :  { %100 = vperm.xlu1 %504, %v82_v10  }
  0x13   :  { %95 = vperm.xlu0 %503, %v81_v11   ;;  %245 = vperm.xlu2 %505, %v235_v13  }
  0x14   :  { %173 = vmatpush.bf16.msra.mxu0 %v446_v15  ;;  %202 = vmatpush.bf16.msra.mxu1 %v446_v15 }
  0x18   :  { %174 = vmatpush.bf16.msra.mxu0 %v445_v16  ;;  %203 = vmatpush.bf16.msra.mxu1 %v445_v16 }
  0x1b   :  { %250 = vperm.xlu0 %503, %v236_v14  }
  0x1c   :  { %175 = vmatpush.bf16.msra.mxu0 %v444_v17  ;;  %204 = vmatpush.bf16.msra.mxu1 %v444_v17 }
  0x20   :  { %176 = vmatpush.bf16.msra.mxu0 %v443_v18  ;;  %205 = vmatpush.bf16.msra.mxu1 %v443_v18 }
  0x5d   :  { %v68_v23 = vpop.permute.xlu2 %67 }
  0x5e   :  { %v77_v35 = vmul.f32 %v464_v29, %v68_v23 }
  0x65   :  { %v73_v34 = vpop.permute.xlu2 %72 }
  0x66   :  { %v78_v37 = vmul.f32 %v465_v31, %v73_v34 }
  0x6d   :  { %v246_v10 = vpop.permute.xlu2 %245 }
  0x74   :  { %v86_v20 = vpop.permute.xlu1 %85 }
  0x75   :  { %v58_v21 = vpop.permute.xlu0 %57 }
  0x76   :  { %v75_v24 = vmul.f32 %v460_v22, %v58_v21 }
  0x78   :  { %v103_v30 = vadd.f32 %v86_v20, %v75_v24 }
  0x7a   :  { %v107_v36 = vmax.f32 %v103_v30, 0.0 }
  0x7c   :  { %v91_v27 = vpop.permute.xlu1 %90 }
  0x7d   :  { %v63_v28 = vpop.permute.xlu0 %62 }
  0x7e   :  { %v76_v32 = vmul.f32 %v461_v25, %v63_v28 }
  0x80   :  { %v104_v33 = vadd.f32 %v91_v27, %v76_v32 }
  0x82   :  { %v108_v38 = vmax.f32 %v104_v33, 0.0 }
  0x84   :  { %v469_v39 = vpack.c.bf16 %v108_v38, %v107_v36  ;;  %v101_v40 = vpop.permute.xlu1 %100 }
  0x85   :  { %v96_v41 = vpop.permute.xlu0 %95  ;;  %v106_v42 = vadd.f32 %v101_v40, %v78_v37 }
  0x86   :  { %v105_v43 = vadd.f32 %v96_v41, %v77_v35  ;;  %470 = vst [vmem:[#allocation2 + $0x28] sm:$0xff] %v469_v39   ;;  %177 = vmatmul.bf16.vlgmr.msra.gmra.mxu0 %v469_v39 }
  0x87   :  { %v110_v44 = vmax.f32 %v106_v42, 0.0 }
  0x88   :  { %v109_v45 = vmax.f32 %v105_v43, 0.0 }
  0x8a   :  { %v474_v46 = vpack.c.bf16 %v110_v44, %v109_v45 }
  0x8c   :  { %497 = vst [vmem:[#allocation2 + $0x8] sm:$0xff] %v474_v46  }
  0x8d   :  { %v452_v5 = vld [vmem:[#allocation2 + $0x28] sm:$0xff]  ;;  %v251_v14 = vpop.permute.xlu0 %250 }
  0x93   :  { %v455_v9 = vld [vmem:[#allocation2 + $0x8] sm:$0xff] }
  0x96   :  { %182 = vmatmul.bf16.gmra.mxu0 %v474_v46 }
 0x103   :  { %v178_v47 = vpop.f32.mrf.mxu0 }
 0x10b   :  { %v180_v48 = vpop.f32.mrf.mxu0 }
 0x10c   :  { %v479_v49 = vpack.c.bf16 %v180_v48, %v178_v47 }
 0x10e   :  { %498 = vst [vmem:[#allocation2 + $0x18] sm:$0xff] %v479_v49   ;;  %206 = vmatmul.bf16.vlgmr.msra.gmra.mxu1 %v479_v49 }
 0x113   :  { %v183_v50 = vpop.f32.mrf.mxu0 }
 0x115   :  { %v453_v1 = vld [vmem:[#allocation2 + $0x18] sm:$0xff] }
 0x11b   :  { %v185_v51 = vpop.f32.mrf.mxu0 }
 0x11c   :  { %v484_v52 = vpack.c.bf16 %v185_v51, %v183_v50 }
 0x11e   :  { %499 = vst [vmem:[#allocation2] sm:$0xff] %v484_v52   ;;  %211 = vmatmul.bf16.gmra.mxu1 %v484_v52 }
 0x125   :  { %v456_v8 = vld [vmem:[#allocation2] sm:$0xff] }
 0x18b   :  { %v207_v53 = vpop.f32.mrf.mxu1 }
 0x18c   :  { %v217_v54 = vmul.f32 2.0, %v207_v53 }
 0x18e   :  { %v221_v57 = vsub.f32 %v217_v54, %v107_v36 }
 0x193   :  { %v209_v55 = vpop.f32.mrf.mxu1 }
 0x194   :  { %v218_v56 = vmul.f32 2.0, %v209_v55 }
 0x196   :  { %v222_v58 = vsub.f32 %v218_v56, %v108_v38 }
 0x198   :  { %v489_v59 = vpack.c.bf16 %v222_v58, %v221_v57 }
 0x19a   :  { %500 = vst [vmem:[#allocation2 + $0x20] sm:$0xff] %v489_v59  }
 0x19b   :  { %v212_v60 = vpop.f32.mrf.mxu1 }
 0x19c   :  { %v219_v62 = vmul.f32 2.0, %v212_v60 }
 0x19e   :  { %v223_v2 = vsub.f32 %v219_v62, %v109_v45 }
 0x1a1   :  { %v454_v61 = vld [vmem:[#allocation2 + $0x20] sm:$0xff] }
 0x1a2   :  { %285 = vmatpush.bf16.msra.mxu2 %v454_v61 }
 0x1a3   :  { %v214_v63 = vpop.f32.mrf.mxu1 }
 0x1a4   :  { %v220_v0 = vmul.f32 2.0, %v214_v63 }
 0x1a6   :  { %v224_v3 = vsub.f32 %v220_v0, %v110_v44  ;;  %286 = vmatpush.bf16.msra.mxu2 %v453_v1 }
 0x1a8   :  { %v494_v4 = vpack.c.bf16 %v224_v3, %v223_v2 }
 0x1aa   :  { %501 = vst [vmem:[#allocation2 + $0x10] sm:$0xff] %v494_v4   ;;  %287 = vmatpush.bf16.msra.mxu2 %v452_v5 }
 0x1ad   :  { %429 = vmatmul.msk.bf16.vlgmr.msra.gmra.mxu2 %vm276_vm0, %v451_v6 }
 0x1b1   :  { %v457_v7 = vld [vmem:[#allocation2 + $0x10] sm:$0xff] }
 0x1b2   :  { %339 = vmatpush.bf16.msra.mxu3 %v457_v7 }
 0x1b6   :  { %340 = vmatpush.bf16.msra.mxu3 %v456_v8 }
 0x1ba   :  { %341 = vmatpush.bf16.msra.mxu3 %v455_v9 }
 0x1bd   :  { %442 = vmatmul.msk.bf16.vlgmr.msra.gmra.mxu3 %vm276_vm0, %v451_v6 }
 0x230   :  { %v289_v11 = vpop.f32.mrf.mxu2 }
 0x231   :  { %v290_v12 = vadd.f32 %v289_v11, %v246_v10 }
 0x233   :  { %294 = vst [vmem:[%s645_s6] sm:$0xff] %v290_v12  ;;  %296 = vadd.xlane.f32.xlu1 %v290_v12  ;;  %v302_v13 = vmul.f32 %v290_v12, %v290_v12 }
 0x235   :  { %304 = vadd.xlane.f32.xlu0 %v302_v13 }
 0x238   :  { %v291_v15 = vpop.f32.mrf.mxu2 }
 0x239   :  { %v292_v16 = vadd.f32 %v291_v15, %v251_v14 }
 0x23b   :  { %295 = vst [vmem:[%s645_s6 + $0x8] sm:$0xff] %v292_v16  ;;  %298 = vadd.xlane.f32.xlu2 %v292_v16  ;;  %v303_v19 = vmul.f32 %v292_v16, %v292_v16 }
 0x240   :  { %v343_v17 = vpop.f32.mrf.mxu3 }
 0x241   :  { %v344_v18 = vadd.f32 %v343_v17, %v246_v10 }
 0x243   :  { %348 = vst [vmem:[%s645_s6 + $0x10] sm:$0xff] %v344_v18  ;;  %306 = vadd.xlane.f32.xlu2 %v303_v19  ;;  %350 = vadd.xlane.f32.xlu1 %v344_v18  ;;  %v356_v20 = vmul.f32 %v344_v18, %v344_v18 }
 0x245   :  { %358 = vadd.xlane.f32.xlu0 %v356_v20 }
 0x248   :  { %v345_v21 = vpop.f32.mrf.mxu3 }
 0x249   :  { %v346_v22 = vadd.f32 %v345_v21, %v251_v14 }
 0x24b   :  { %349 = vst [vmem:[%s645_s6 + $0x18] sm:$0xff] %v346_v22  ;;  %352 = vadd.xlane.f32.xlu2 %v346_v22  ;;  %v357_v23 = vmul.f32 %v346_v22, %v346_v22 }
 0x24d   :  { %360 = vadd.xlane.f32.xlu1 %v357_v23 }
 0x2a6   :  { %v297_v24 = vpop.xlane.xlu1 %296 }
 0x2a8   :  { %v305_v26 = vpop.xlane.xlu0 %304 }
 0x2ae   :  { %v299_v25 = vpop.xlane.xlu2 %298 }
 0x2b6   :  { %v307_v27 = vpop.xlane.xlu2 %306  ;;  %v351_v28 = vpop.xlane.xlu1 %350 }
 0x2b7   :  { %v354_v29 = vadd.f32 %v351_v28, %v297_v24 }
 0x2b8   :  { %v359_v30 = vpop.xlane.xlu0 %358 }
 0x2b9   :  { %365 = vst.msk [vmem:[%s646_s7] sm:$0xff] %vm364_vm1, %v354_v29  ;;  %v362_v31 = vadd.f32 %v359_v30, %v305_v26 }
 0x2bb   :  { %367 = vst.msk [vmem:[%s647_s8] sm:$0xff] %vm364_vm1, %v362_v31 }
 0x2be   :  { %v353_v32 = vpop.xlane.xlu2 %352 }
 0x2bf   :  { %v355_v33 = vadd.f32 %v353_v32, %v299_v25 }
 0x2c0   :  { %v361_v34 = vpop.xlane.xlu1 %360 }
 0x2c1   :  { %366 = vst.msk [vmem:[%s646_s7 + $0x8] sm:$0xff] %vm364_vm1, %v355_v33  ;;  %v363_v35 = vadd.f32 %v361_v34, %v307_v27 }
 0x2c3   :  { %368 = vst.msk [vmem:[%s647_s8 + $0x8] sm:$0xff] %vm364_vm1, %v363_v35 }

</bundles_post_ra>
